<compile_context>
chip_gen: v7x
topology: tpu7x:2x2x1
jax: 0.10.0
libtpu: 0.0.40
codegen_flags: <defaults>
</compile_context>

<pallas_src>
import functools

import jax
import jax.numpy as jnp
from jax.experimental import pallas as pl
from jax.experimental.pallas import tpu as pltpu


# ----------------------------------------------------------------------------
# Kernels
# ----------------------------------------------------------------------------
def _mlp_fused_kernel(x_ref, w1_ref, b1_ref, w2_ref, b2_ref, out_ref):
    """Whole problem resident in VMEM (gridless small path)."""
    w_dt = w1_ref.dtype
    # Layer 1: MXU matmul (f32 accumulate), bias + sigmoid in f32.
    h = jnp.dot(x_ref[...].astype(w_dt), w1_ref[...],
                preferred_element_type=jnp.float32)
    h = jax.nn.sigmoid(h + b1_ref[...])
    # Layer 2.
    o = jnp.dot(h.astype(w_dt), w2_ref[...],
                preferred_element_type=jnp.float32)
    out_ref[...] = jax.nn.sigmoid(o + b2_ref[...]).astype(out_ref.dtype)


def _mlp_ktiled_kernel(x_ref, w1_ref, b1_ref, w2_ref, b2_ref, out_ref, acc_ref):
    """Grid = (batch tiles, hidden chunks). Accumulate layer-2 over hidden chunks.

    Exactness of the padding scheme: hidden columns beyond the real `hidden`
    have zero W1 columns and zero b1, so h_pad = sigmoid(0) = 0.5; the matching
    W2 rows are zero, so padded hidden entries contribute nothing to acc.
    """
    k = pl.program_id(1)

    @pl.when(k == 0)
    def _():
        acc_ref[...] = jnp.zeros_like(acc_ref)

    w_dt = w1_ref.dtype
    h = jnp.dot(x_ref[...].astype(w_dt), w1_ref[...],
                preferred_element_type=jnp.float32)
    h = jax.nn.sigmoid(h + b1_ref[...])                       # f32
    acc_ref[...] += jnp.dot(h.astype(w_dt), w2_ref[...],
                            preferred_element_type=jnp.float32)

    @pl.when(k == pl.num_programs(1) - 1)
    def _():
        out_ref[...] = jax.nn.sigmoid(acc_ref[...] + b2_ref[...]).astype(out_ref.dtype)


# ----------------------------------------------------------------------------
# Helpers
# ----------------------------------------------------------------------------
def _cdiv(a, b):
    return -(-a // b)


def _round_up(n, m):
    return ((n + m - 1) // m) * m


@functools.lru_cache(maxsize=1)
def _vmem_budget_bytes():
    """Usable VMEM budget (bytes), derived per generation; conservative fallback."""
    try:
        info = pltpu.get_tpu_info()
        cap = int(getattr(info, "vmem_capacity_bytes", 0) or 0)
        if cap > 0:
            return (cap * 3) // 4          # leave headroom for compiler temps
    except Exception:
        pass
    return 48 * 1024 * 1024                # safe even on v7x (64 MiB physical)


def _buffered_spec(block_shape, index_map, buffers):
    """BlockSpec with explicit buffer count; falls back if pipeline_mode unsupported."""
    try:
        return pl.BlockSpec(block_shape, index_map,
                            pipeline_mode=pl.Buffered(buffers))
    except TypeError:
        return pl.BlockSpec(block_shape, index_map)


# ----------------------------------------------------------------------------
# Parameter preparation (once, outside the per-call forward)
# ----------------------------------------------------------------------------
def prepare_mlp_params(w1, b1, w2, b2, *, mxu_dtype=None, hid_chunk=512):
    """Pad (and optionally cast) the weights once.

    w1: (in, hidden), b1: (hidden,), w2: (hidden, out), b2: (out,).
    mxu_dtype=jnp.bfloat16 feeds the MXU at its native rate (f32 accumulate);
    biases stay f32 so bias add + sigmoid run in f32.
    hid_chunk: target hidden (K) chunk width for the tiled path (rounded to 128).
    """
    in_dim, hidden = w1.shape
    out_dim = w2.shape[1]
    w_dt = jnp.dtype(mxu_dtype) if mxu_dtype is not None else jnp.dtype(w1.dtype)

    hid_p = _round_up(hidden, 128)
    hk_cap = max(128, _round_up(int(hid_chunk), 128))
    nk = _cdiv(hid_p, hk_cap)
    hk = _round_up(_cdiv(hid_p, nk), 128)
    hid_p = nk * hk
    out_p = _round_up(out_dim, 128)

    # Zero padding is exact (see _mlp_ktiled_kernel docstring).
    w1_p = jnp.zeros((in_dim, hid_p), w_dt).at[:, :hidden].set(w1.astype(w_dt))
    b1_p = jnp.zeros((1, hid_p), jnp.float32).at[0, :hidden].set(b1.astype(jnp.float32))
    w2_p = jnp.zeros((hid_p, out_p), w_dt).at[:hidden, :out_dim].set(w2.astype(w_dt))
    b2_p = jnp.zeros((1, out_p), jnp.float32).at[0, :out_dim].set(b2.astype(jnp.float32))

    return {"w1": w1_p, "b1": b1_p, "w2": w2_p, "b2": b2_p,
            "out_dim": out_dim, "hk": hk}


# ----------------------------------------------------------------------------
# Forward
# ----------------------------------------------------------------------------
@functools.partial(jax.jit, static_argnames=("out_dim", "hk", "block_b"))
def _mlp_forward_impl(x, w1_p, b1_p, w2_p, b2_p, *, out_dim, hk, block_b):
    B, in_dim = x.shape
    hid_p = w1_p.shape[1]
    out_p = w2_p.shape[1]
    nk = hid_p // hk

    x_bytes = x.dtype.itemsize
    w_bytes = w1_p.dtype.itemsize
    o_bytes = x.dtype.itemsize
    budget = _vmem_budget_bytes()

    # ---- gridless-vs-grid decision based on resident bytes, not just B ------
    b8 = _round_up(B, 8)
    gridless_bytes = (B * in_dim * x_bytes                     # x
                      + in_dim * hid_p * w_bytes               # W1
                      + hid_p * out_p * w_bytes                # W2
                      + (hid_p + out_p) * 4                    # biases
                      + b8 * hid_p * 4                         # h intermediate (f32)
                      + b8 * out_p * 4                         # pre-cast output temp
                      + B * out_p * o_bytes)                   # out
    use_grid = (B > block_b) or (gridless_bytes > budget // 2)

    if not use_grid:
        # Single gridless invocation: no per-step pipeline/DMA bookkeeping,
        # everything pinned whole in VMEM, no HBM-side copies of x.
        vmem = pl.BlockSpec(memory_space=pltpu.MemorySpace.VMEM)
        out = pl.pallas_call(
            _mlp_fused_kernel,
            out_shape=jax.ShapeDtypeStruct((B, out_p), x.dtype),
            in_specs=[vmem] * 5,
            out_specs=vmem,
            compiler_params=pltpu.CompilerParams(vmem_limit_bytes=budget),
        )(x, w1_p, b1_p, w2_p, b2_p)
        return out[:, :out_dim]

    # ---- grid path: batch tiles ("parallel") x hidden chunks ("arbitrary") --
    wb = 1 if nk == 1 else 2       # single-buffer weights only when never revisited
    fixed = (wb * (in_dim * hk + hk * out_p) * w_bytes   # weight chunks
             + (hk + out_p) * 4)                         # biases
    per_row = (2 * in_dim * x_bytes                      # x tile (double-buffered)
               + 2 * out_p * o_bytes                     # out tile (double-buffered)
               + out_p * 4                               # f32 accumulator
               + hk * 4 + hk * w_bytes)                  # h chunk (f32 + cast copy)
    tb_vmem = max(8, ((budget - fixed) // max(per_row, 1)) // 8 * 8)
    tile_cap = max(8, min(block_b, tb_vmem, 2048))

    # Bound batch-padding waste: even tiles, at most 7 pad rows per step.
    n_steps = _cdiv(B, tile_cap)
    tb = _round_up(_cdiv(B, n_steps), 8)
    b_p = n_steps * tb
    x_in = x if b_p == B else jnp.zeros((b_p, in_dim), x.dtype).at[:B].set(x)

    grid_spec = pltpu.PrefetchScalarGridSpec(
        num_scalar_prefetch=0,
        grid=(n_steps, nk),
        in_specs=[
            # x: natural feature width (no lane padding); resident across k.
            pl.BlockSpec((tb, in_dim), lambda i, k: (i, 0)),
            _buffered_spec((in_dim, hk), lambda i, k: (0, k), wb),
            _buffered_spec((1, hk), lambda i, k: (0, k), wb),
            _buffered_spec((hk, out_p), lambda i, k: (k, 0), wb),
            _buffered_spec((1, out_p), lambda i, k: (0, 0), 1),
        ],
        out_specs=pl.BlockSpec((tb, out_p), lambda i, k: (i, 0)),
        scratch_shapes=[pltpu.VMEM((tb, out_p), jnp.float32)],
    )

    out = pl.pallas_call(
        _mlp_ktiled_kernel,
        out_shape=jax.ShapeDtypeStruct((b_p, out_p), x.dtype),
        grid_spec=grid_spec,
        compiler_params=pltpu.CompilerParams(
            dimension_semantics=("parallel", "arbitrary"),
            vmem_limit_bytes=budget,
        ),
    )(x_in, w1_p, b1_p, w2_p, b2_p)
    return out[:B, :out_dim]


def mlp_forward(x, params, *, block_b=512):
    """x: (B, input_size); params from prepare_mlp_params(). Returns (B, output_size)."""
    return _mlp_forward_impl(
        x, params["w1"], params["b1"], params["w2"], params["b2"],
        out_dim=params["out_dim"], hk=params["hk"], block_b=block_b)


def xavier_uniform(key, fan_in, fan_out, dtype=jnp.float32):
    # Matches torch.nn.init.xavier_uniform_ (gain=1): U(-a, a), a = sqrt(6/(fan_in+fan_out)).
    a = jnp.sqrt(6.0 / (fan_in + fan_out))
    w = jax.random.uniform(key, (fan_out, fan_in), dtype=dtype, minval=-a, maxval=a)
    return w.T        # store as (in, out)


# ----------------------------------------------------------------------------
if __name__ == "__main__":
    input_size, hidden_size, output_size = 32, 64, 16
    batch = 8

    key = jax.random.PRNGKey(0)
    kx, k1, k2 = jax.random.split(key, 3)

    x = jax.random.normal(kx, (batch, input_size), dtype=jnp.float32)
    w1 = xavier_uniform(k1, input_size, hidden_size)           # (in, hidden)
    b1 = jnp.zeros((hidden_size,), dtype=jnp.float32)
    w2 = xavier_uniform(k2, hidden_size, output_size)          # (hidden, out)
    b2 = jnp.zeros((output_size,), dtype=jnp.float32)

    ref = jax.nn.sigmoid(jax.nn.sigmoid(x @ w1 + b1) @ w2 + b2)

    # 1) Small problem -> gridless path, f32 MXU feed (exact vs the reference).
    params_f32 = prepare_mlp_params(w1, b1, w2, b2)
    out = jax.block_until_ready(mlp_forward(x, params_f32))
    assert out.shape == (batch, output_size)
    assert jnp.allclose(out, ref, atol=1e-5, rtol=1e-5)

    # 2) Larger batch/hidden -> grid path (batch x hidden tiling), bf16 MXU feed.
    big_b, big_hidden = 512, 256
    kx2, k3, k4 = jax.random.split(jax.random.PRNGKey(1), 3)
    xb = jax.random.normal(kx2, (big_b, input_size), dtype=jnp.float32)
    w1b = xavier_uniform(k3, input_size, big_hidden)
    b1b = jnp.zeros((big_hidden,), dtype=jnp.float32)
    w2b = xavier_uniform(k4, big_hidden, output_size)
    b2b = jnp.zeros((output_size,), dtype=jnp.float32)

    params_bf16 = prepare_mlp_params(w1b, b1b, w2b, b2b,
                                     mxu_dtype=jnp.bfloat16, hid_chunk=128)
    out_b = jax.block_until_ready(mlp_forward(xb, params_bf16, block_b=128))
    ref_b = jax.nn.sigmoid(jax.nn.sigmoid(xb @ w1b + b1b) @ w2b + b2b)
    assert out_b.shape == (big_b, output_size)
    assert jnp.allclose(out_b, ref_b, atol=2e-2, rtol=2e-2)   # bf16 MXU tolerance

    print("KERNEL_OK")
</pallas_src>

<mosaic_0001>
module attributes {stable_mosaic.version = 11 : i64} {
  func.func @_mlp_fused_kernel(%arg0: memref<8x32xf32, #tpu.memory_space<vmem>>, %arg1: memref<32x128xf32, #tpu.memory_space<vmem>>, %arg2: memref<1x128xf32, #tpu.memory_space<vmem>>, %arg3: memref<128x128xf32, #tpu.memory_space<vmem>>, %arg4: memref<1x128xf32, #tpu.memory_space<vmem>>, %arg5: memref<8x128xf32, #tpu.memory_space<vmem>>) attributes {dimension_semantics = [], scalar_prefetch = 0 : i64, scratch_operands = 0 : i64, tpu.core_type = #tpu.core_type<tc>} {
    %c0 = arith.constant 0 : index
    %c0_0 = arith.constant 0 : index
    %0 = vector.load %arg0[%c0, %c0_0] : memref<8x32xf32, #tpu.memory_space<vmem>>, vector<8x32xf32>
    %c0_1 = arith.constant 0 : index
    %c0_2 = arith.constant 0 : index
    %1 = vector.load %arg1[%c0_1, %c0_2] : memref<32x128xf32, #tpu.memory_space<vmem>>, vector<32x128xf32>
    %cst = arith.constant dense<0.000000e+00> : vector<8x128xf32>
    %2 = tpu.matmul %0, %1, %cst {dimension_numbers = #tpu.dot_dimension_numbers<[1], [0], [0], [1], [0, 0, 1, 1], [], []>} : vector<8x32xf32>, vector<32x128xf32>, vector<8x128xf32> -> vector<8x128xf32>
    %c0_3 = arith.constant 0 : index
    %c0_4 = arith.constant 0 : index
    %3 = vector.load %arg2[%c0_3, %c0_4] : memref<1x128xf32, #tpu.memory_space<vmem>>, vector<1x128xf32>
    %4 = vector.broadcast %3 : vector<1x128xf32> to vector<8x128xf32>
    %5 = arith.addf %2, %4 : vector<8x128xf32>
    %6 = arith.negf %5 : vector<8x128xf32>
    %7 = math.exp %6 : vector<8x128xf32>
    %cst_5 = arith.constant 1.000000e+00 : f32
    %8 = vector.broadcast %cst_5 : f32 to vector<8x128xf32>
    %9 = arith.addf %8, %7 : vector<8x128xf32>
    %10 = arith.divf %8, %9 : vector<8x128xf32>
    %c0_6 = arith.constant 0 : index
    %c0_7 = arith.constant 0 : index
    %11 = vector.load %arg3[%c0_6, %c0_7] : memref<128x128xf32, #tpu.memory_space<vmem>>, vector<128x128xf32>
    %cst_8 = arith.constant dense<0.000000e+00> : vector<8x128xf32>
    %12 = tpu.matmul %10, %11, %cst_8 {dimension_numbers = #tpu.dot_dimension_numbers<[1], [0], [0], [1], [0, 0, 1, 1], [], []>} : vector<8x128xf32>, vector<128x128xf32>, vector<8x128xf32> -> vector<8x128xf32>
    %c0_9 = arith.constant 0 : index
    %c0_10 = arith.constant 0 : index
    %13 = vector.load %arg4[%c0_9, %c0_10] : memref<1x128xf32, #tpu.memory_space<vmem>>, vector<1x128xf32>
    %14 = vector.broadcast %13 : vector<1x128xf32> to vector<8x128xf32>
    %15 = arith.addf %12, %14 : vector<8x128xf32>
    %16 = arith.negf %15 : vector<8x128xf32>
    %17 = math.exp %16 : vector<8x128xf32>
    %cst_11 = arith.constant 1.000000e+00 : f32
    %18 = vector.broadcast %cst_11 : f32 to vector<8x128xf32>
    %19 = arith.addf %18, %17 : vector<8x128xf32>
    %20 = arith.divf %18, %19 : vector<8x128xf32>
    %c0_12 = arith.constant 0 : index
    %c0_13 = arith.constant 0 : index
    %21 = vector.load %arg5[%c0_12, %c0_13] : memref<8x128xf32, #tpu.memory_space<vmem>>, vector<8x128xf32>
    tpu.vector_store %arg5[%c0_12, %c0_13], %20 {strides = array<i32>} : memref<8x128xf32, #tpu.memory_space<vmem>>, vector<8x128xf32>,
    return
  }
}

</mosaic_0001>

<bundles_post_ra>
// kernel: _mlp_forward_impl.1
= control target key start
LH: loop header
LB: loop body
LE: loop exit
PB: predicated region body
PF: predicated region fallthrough
CT: control target
= control target key end

     0   :  { %10 = vsyncpa [#allocation3], 0  ;;  %s581_s0 = inlined_call_operand.hbm [shape: f32[8,32], index: 0, kind: input, shape index: {}]   ;;  %s582_s1 = inlined_call_operand.hbm [shape: f32[32,128], index: 1, kind: input, shape index: {}]   ;;  %s583_s2 = inlined_call_operand.vmem [shape: f32[1,128], index: 2, kind: input, shape index: {}]   ;;  %s584_s3 = inlined_call_operand.hbm [shape: f32[128,128], index: 3, kind: input, shape index: {}]   ;;  %s585_s4 = inlined_call_operand.vmem [shape: f32[1,128], index: 4, kind: input, shape index: {}]   ;;  %s586_s5 = inlined_call_operand.hbm [shape: f32[8,128], index: 5, kind: output, shape index: {}]  }
   0x1   :  { %11 = vsyncpa [#allocation6], 0 }
   0x2   :  { %12 = vsyncpa [#allocation4], 0  ;;  %s482_s18 = smov [#allocation5]   ;;  %s388_s22 = scalar_lea.hbm %s582_s1, 512 }
   0x3   :  { %s28_s19 = sshll.u32 %s482_s18, 4  ;;  %p389_p0 = scmp.ne.s32.totalorder %s582_s1, %s388_s22  ;;  %s29_s19 = int_to_ptr.vmem [resolvable:$true] %s28_s19 }
   0x4   :  { %p392_p1 = scmp.lt.u32.totalorder %s388_s22, %s582_s1 }
   0x6   :  { %p394_p2 = pnand %p392_p1, %p389_p0 }
   0x8   :  { %397 = shalt.err (!%p394_p2)
}
   0x9   :  { %s398_s27 = scalar_lea.vmem %s29_s19, 512  ;;  %p403_p4 = scmp.lt.s32.totalorder %s29_s19, %s29_s19 }
   0xa   :  { %p399_p3 = scmp.ne.s32.totalorder %s29_s19, %s398_s27  ;;  %p404_p5 = scmp.lt.s32.totalorder %s398_s27, %s398_s27 }
   0xc   :  { %p405_p6 = por %p404_p5, %p403_p4 }
   0xe   :  { %p406_p7 = pnand %p405_p6, %p399_p3 }
  0x10   :  { %409 = shalt.err (!%p406_p7)
}
  0x11   :  { %s483_s28 = smov 128   ;;  %s484_s29 = smov 8  }
  0x12   :  { %34 = dma.hbm_to_vmem [thread:$0]  %s582_s1, 512, %s29_s19, [#allocation6], %s483_s28, %s483_s28, %s484_s29  }
  0x13   :  { %s485_s7 = smov [#allocation2]   ;;  %s486_s9 = smov [#allocation7]  }
  0x14   :  { %s19_s8 = sshll.u32 %s485_s7, 4  ;;  %s42_s10 = sshll.u32 %s486_s9, 4  ;;  %s20_s8 = int_to_ptr.vmem [resolvable:$true] %s19_s8  ;;  %s43_s10 = int_to_ptr.vmem [resolvable:$true] %s42_s10 }
  0x15   :  { %s410_s13 = scalar_lea.hbm %s581_s0, 128 }
  0x16   :  { %p411_p8 = scmp.ne.s32.totalorder %s581_s0, %s410_s13  ;;  %p414_p9 = scmp.lt.u32.totalorder %s410_s13, %s581_s0 }
  0x18   :  { %p416_p10 = pnand %p414_p9, %p411_p8 }
  0x1a   :  { %419 = shalt.err (!%p416_p10)
}
  0x1b   :  { %s420_s1 = scalar_lea.vmem %s20_s8, 128  ;;  %p425_p12 = scmp.lt.s32.totalorder %s20_s8, %s20_s8 }
  0x1c   :  { %p421_p11 = scmp.ne.s32.totalorder %s20_s8, %s420_s1  ;;  %p426_p13 = scmp.lt.s32.totalorder %s420_s1, %s420_s1 }
  0x1e   :  { %p427_p0 = por %p426_p13, %p425_p12 }
  0x20   :  { %p428_p1 = pnand %p427_p0, %p421_p11 }
  0x22   :  { %431 = shalt.err (!%p428_p1)
}
  0x23   :  { %22 = dma.hbm_to_vmem [thread:$0]  %s581_s0, 128, %s20_s8, [#allocation3]  }
  0x24   :  { %s432_s22 = scalar_lea.hbm %s584_s3, 2048 }
  0x25   :  { %p433_p2 = scmp.ne.s32.totalorder %s584_s3, %s432_s22  ;;  %p436_p3 = scmp.lt.u32.totalorder %s432_s22, %s584_s3 }
  0x27   :  { %p438_p4 = pnand %p436_p3, %p433_p2 }
  0x29   :  { %441 = shalt.err (!%p438_p4)
}
  0x2a   :  { %s442_s27 = scalar_lea.vmem %s43_s10, 2048  ;;  %p447_p6 = scmp.lt.s32.totalorder %s43_s10, %s43_s10 }
  0x2b   :  { %p443_p5 = scmp.ne.s32.totalorder %s43_s10, %s442_s27  ;;  %p448_p7 = scmp.lt.s32.totalorder %s442_s27, %s442_s27 }
  0x2d   :  { %p449_p8 = por %p448_p7, %p447_p6 }
  0x2f   :  { %p450_p9 = pnand %p449_p8, %p443_p5 }
  0x31   :  { %453 = shalt.err (!%p450_p9)
}
  0x32   :  { %48 = dma.hbm_to_vmem [thread:$0]  %s584_s3, 2048, %s43_s10, [#allocation6], %s483_s28, %s483_s28, %s484_s29  }
  0x33   :  { %476 = dma.done.wait [#allocation3], 128  }
  0x34   :  { %477 = vsyncadd [#allocation3], 4294967168 }
  0x35   :  { %478 = dma.done.wait [#allocation6], 2560  }
  0x36   :  { %479 = vsyncadd [#allocation6], 4294964736  ;;  %v487_v0 = vmov 0.0|0.0   ;;  %vm488_vm0 = vmmov 0   ;;  %v489_v1 = vmov 0.0   ;;  %v61_v2 = vld [vmem:[#allocation5] sm:$0xff] }
  0x37   :  { %341 = vmatprep.subr.bf16.mxu0 %v487_v0  ;;  %303 = vmatprep.mubr.msk.f32.mxu0 %vm488_vm0, %v489_v1  ;;  %v62_v3 = vld [vmem:[#allocation5 + $0x8] sm:$0xff]  ;;  %v63_v4 = vld [vmem:[#allocation5 + $0x10] sm:$0xff]  ;;  %v64_v6 = vld [vmem:[#allocation5 + $0x18] sm:$0xff]  ;;  %vm72_vm1 = vcmask 261120  }
  0x38   :  { %347 = vmatprep.subr.bf16.mxu1 %v487_v0  ;;  %338 = vmatprep.mubr.msk.f32.mxu1 %vm488_vm0, %v489_v1  ;;  %v342_v5 = vpack.c.bf16 %v62_v3, %v61_v2  ;;  %v152_v7 = vld [vmem:[#allocation7] sm:$0xff]  ;;  %v153_v8 = vld [vmem:[#allocation7 + $0x8] sm:$0xff]  ;;  %v345_v9 = vpack.c.bf16 %v64_v6, %v63_v4  ;;  %v60_v11 = vld [vmem:[#allocation2] sm:$0xff] }
  0x39   :  { %v348_v10 = vpack.c.bf16 %v153_v8, %v152_v7  ;;  %v154_v12 = vld [vmem:[#allocation7 + $0x10] sm:$0xff]  ;;  %v155_v13 = vld [vmem:[#allocation7 + $0x18] sm:$0xff]  ;;  %v156_v15 = vld [vmem:[#allocation7 + $0x20] sm:$0xff] }
  0x3a   :  { %343 = vmatpush3.bf16.msra.mxu0 %v342_v5  ;;  %v351_v14 = vpack.c.bf16 %v155_v13, %v154_v12  ;;  %v157_v16 = vld [vmem:[#allocation7 + $0x28] sm:$0xff]  ;;  %v158_v18 = vld [vmem:[#allocation7 + $0x30] sm:$0xff]  ;;  %v159_v19 = vld [vmem:[#allocation7 + $0x38] sm:$0xff] }
  0x3b   :  { %344 = vmatprep.subr.bf16.mxu0 %v487_v0  ;;  %349 = vmatpush3.bf16.msra.mxu1 %v348_v10  ;;  %v354_v17 = vpack.c.bf16 %v157_v16, %v156_v15  ;;  %v357_v20 = vpack.c.bf16 %v159_v19, %v158_v18  ;;  %v160_v21 = vld [vmem:[#allocation7 + $0x40] sm:$0xff]  ;;  %v161_v22 = vld [vmem:[#allocation7 + $0x48] sm:$0xff]  ;;  %v162_v24 = vld [vmem:[#allocation7 + $0x50] sm:$0xff] }
  0x3c   :  { %350 = vmatprep.subr.bf16.mxu1 %v487_v0  ;;  %v360_v23 = vpack.c.bf16 %v161_v22, %v160_v21  ;;  %v163_v25 = vld [vmem:[#allocation7 + $0x58] sm:$0xff]  ;;  %v164_v27 = vld [vmem:[#allocation7 + $0x60] sm:$0xff]  ;;  %v165_v28 = vld [vmem:[#allocation7 + $0x68] sm:$0xff] }
  0x3d   :  { %v363_v26 = vpack.c.bf16 %v163_v25, %v162_v24  ;;  %v366_v29 = vpack.c.bf16 %v165_v28, %v164_v27  ;;  %v166_v30 = vld [vmem:[#allocation7 + $0x70] sm:$0xff]  ;;  %v167_v31 = vld [vmem:[#allocation7 + $0x78] sm:$0xff] }
  0x3e   :  { %346 = vmatpush3.bf16.msra.mxu0 %v345_v9  ;;  %v369_v32 = vpack.c.bf16 %v167_v31, %v166_v30  ;;  %v268_v33 = vld [vmem:[%s583_s2] ss:$0 sm:$0xff]  ;;  %s490_s2 = smov [#allocation8]  }
  0x3f   :  { %352 = vmatpush3.bf16.msra.mxu1 %v351_v14  ;;  %v271_v41 = vld [vmem:[%s585_s4] ss:$0 sm:$0xff]  ;;  %s258_s7 = sshll.u32 %s490_s2, 4  ;;  %s259_s7 = int_to_ptr.vmem [resolvable:$true] %s258_s7 }
  0x40   :  { %353 = vmatprep.subr.bf16.mxu1 %v487_v0  ;;  %s454_s8 = scalar_lea.vmem %s259_s7, 128  ;;  %p459_p11 = scmp.lt.s32.totalorder %s259_s7, %s259_s7 }
  0x41   :  { %304 = vmatmul.mubr.msk.f32.vlgmr.msra.gmra.mrb[0].mxu0 %vm72_vm1, %v60_v11  ;;  %p455_p10 = scmp.ne.s32.totalorder %s259_s7, %s454_s8  ;;  %p460_p12 = scmp.lt.s32.totalorder %s454_s8, %s454_s8 }
  0x43   :  { %355 = vmatpush3.bf16.msra.mxu1 %v354_v17  ;;  %p461_p13 = por %p460_p12, %p459_p11 }
  0x44   :  { %356 = vmatprep.subr.bf16.mxu1 %v487_v0 }
  0x45   :  { %p462_p0 = pnand %p461_p13, %p455_p10 }
  0x47   :  { %358 = vmatpush3.bf16.msra.mxu1 %v357_v20 }
  0x48   :  { %359 = vmatprep.subr.bf16.mxu1 %v487_v0 }
  0x4b   :  { %361 = vmatpush3.bf16.msra.mxu1 %v360_v23 }
  0x4c   :  { %362 = vmatprep.subr.bf16.mxu1 %v487_v0 }
  0x4f   :  { %364 = vmatpush3.bf16.msra.mxu1 %v363_v26 }
  0x50   :  { %365 = vmatprep.subr.bf16.mxu1 %v487_v0 }
  0x53   :  { %367 = vmatpush3.bf16.msra.mxu1 %v366_v29 }
  0x54   :  { %368 = vmatprep.subr.bf16.mxu1 %v487_v0 }
  0x57   :  { %370 = vmatpush3.bf16.msra.mxu1 %v369_v32 }
 0x114   :  { %v142_v34 = vpop.f32.mrb[0].mxu0 }
 0x115   :  { %v143_v35 = vadd.f32 %v268_v33, %v142_v34  ;;  %v305_v36 = vpop.f32.mrb[1].mxu0 }
 0x117   :  { %v270_v37 = vmul.f32 -1.442695, %v143_v35 }
 0x119   :  { %380 = vpow2.f32 %v270_v37 }
 0x123   :  { %v381_v38 = vpop.eup %380 }
 0x124   :  { %v149_v39 = vadd.f32 1.0, %v381_v38 }
 0x126   :  { %382 = vrcp.f32 %v149_v39 }
 0x130   :  { %v383_v40 = vpop.eup %382 }
 0x131   :  { %339 = vmatmul.mubr.f32.vlgmr.msra.gmra.mrb[0].mxu1 %v383_v40 }
 0x204   :  { %v241_v42 = vpop.f32.mrb[0].mxu1 }
 0x205   :  { %v242_v43 = vadd.f32 %v271_v41, %v241_v42  ;;  %v340_v44 = vpop.f32.mrb[1].mxu1 }
 0x207   :  { %v272_v45 = vmul.f32 -1.442695, %v242_v43 }
 0x209   :  { %384 = vpow2.f32 %v272_v45 }
 0x213   :  { %v385_v46 = vpop.eup %384 }
 0x214   :  { %v248_v47 = vadd.f32 1.0, %v385_v46 }
 0x216   :  { %386 = vrcp.f32 %v248_v47 }
 0x220   :  { %v387_v48 = vpop.eup %386 }
 0x221   :  { %251 = vst [vmem:[#allocation8] sm:$0xff] %v387_v48 }
 0x222   :  { %465 = shalt.err (!%p462_p0)
}
 0x223   :  { %s466_s10 = scalar_lea.hbm %s586_s5, 128 }
 0x224   :  { %p467_p1 = scmp.ne.s32.totalorder %s586_s5, %s466_s10  ;;  %p470_p2 = scmp.lt.u32.totalorder %s466_s10, %s586_s5 }
 0x226   :  { %p472_p3 = pnand %p470_p2, %p467_p1 }
 0x228   :  { %475 = shalt.err (!%p472_p3)
}
 0x229   :  { %261 = dma.vmem_to_hbm [thread:$0]  %s259_s7, 128, %s586_s5, [#allocation4]  }
 0x22a   :  { %480 = dma.done.wait [#allocation4], 128  }
 0x22b   :  { %481 = vsyncadd [#allocation4], 4294967168 }
 0x22c   :  { %265 = vsyncpa [#allocation3], 1 }
 0x22d   :  { %266 = vsyncpa [#allocation6], 1 }
 0x22e   :  { %267 = vsyncpa [#allocation4], 1 }

</bundles_post_ra>
